<compile_context>
chip_gen: v5e
topology: v5e:2x2
jax: 0.10.0
libtpu: 0.0.40
codegen_flags: <defaults>
</compile_context>

<pallas_src>
import functools

import jax
import jax.numpy as jnp
from jax.experimental import pallas as pl
from jax.experimental.pallas import tpu as pltpu

_LANE = 128
_SUBLANE = 8


def _round_up(x, m):
    return (x + m - 1) // m * m


def _dqn_kernel(t_ref, v_ref, vec_ref, w_ref, out_ref, *, wp, hp, ap, out_cols):
    """One batch tile of the DQN forward pass.

    t_ref   : (TB, 1)      int32  time index
    v_ref   : (TB, 1)      f32    volume
    vec_ref : (8, C)       f32    row 0 = embed W (at concat offset, zero-pad)
                                  row 1 = embed b (same layout)
                                  row 2 = hidden bias, row 3 = out bias
    w_ref   : (WP+HP, C)   f32    rows [0:WP)     = hidden weight (zero-pad)
                                  rows [WP:WP+HP) = out weight    (zero-pad)
    out_ref : (TB, OUT)    f32    scores in cols [0, A), zeros elsewhere
    """
    tb = t_ref.shape[0]
    t_idx = t_ref[...]                         # (TB, 1) int32
    v = v_ref[...]                             # (TB, 1) f32

    we = vec_ref[0:1, :wp]                     # (1, WP)
    be = vec_ref[1:2, :wp]                     # (1, WP)
    bh = vec_ref[2:3, :hp]                     # (1, HP)
    bo = vec_ref[3:4, :ap]                     # (1, AP)

    # Rebuild one_hot(t, T+1) in-register and fold the concat:
    #   input_v = [one_hot | v_embed] == one_hot_padded + v * we_pad + be_pad
    col = jax.lax.broadcasted_iota(jnp.int32, (tb, wp), 1)
    onehot = (col == t_idx).astype(jnp.float32)          # zero in embed/pad cols
    inp = onehot + v * we + be                           # (TB, WP)

    wh = w_ref[0:wp, :hp]                                # (WP, HP)
    wo = w_ref[wp:wp + hp, :ap]                          # (HP, AP)

    h = jax.nn.sigmoid(
        jnp.dot(inp, wh, preferred_element_type=jnp.float32) + bh)   # (TB, HP)
    # Padded hidden cols are sigmoid(0)=0.5 but hit all-zero rows of wo.
    scores = jnp.dot(h, wo, preferred_element_type=jnp.float32) + bo  # (TB, AP)
    # Narrow the store: only the first out_cols lanes go back to HBM.
    out_ref[...] = scores[:, :out_cols].astype(out_ref.dtype)


def pack_params(we, be, wh, bh, wo, bo, *, time_dims, embed_dims,
                hidden_dims, n_actions):
    """Pack the six Linear params into two lane-dense, zero-padded slabs."""
    t1 = time_dims + 1
    w_in = t1 + embed_dims                     # hidden fan-in (T+1+E)
    wp = _round_up(w_in, _LANE)
    hp = _round_up(hidden_dims, _LANE)
    ap = _round_up(n_actions, _LANE)
    lanes = max(wp, hp, ap)

    # embed weight is a length-E vector regardless of (1,E) vs torch (E,1) layout
    we_vec = jnp.asarray(we, jnp.float32).reshape(-1)
    assert we_vec.shape[0] == embed_dims, "embed weight must have E elements"
    assert wh.shape == (w_in, hidden_dims), "hidden weight must be (T+1+E, H)"
    assert wo.shape == (hidden_dims, n_actions), "out weight must be (H, A)"

    vec = jnp.zeros((_SUBLANE, lanes), jnp.float32)
    vec = vec.at[0, t1:w_in].set(we_vec)                      # embed W at offset
    vec = vec.at[1, t1:w_in].set(jnp.asarray(be).reshape(-1))  # embed b at offset
    vec = vec.at[2, :hidden_dims].set(jnp.asarray(bh).reshape(-1))
    vec = vec.at[3, :n_actions].set(jnp.asarray(bo).reshape(-1))

    w = jnp.zeros((wp + hp, lanes), jnp.float32)
    w = w.at[:w_in, :hidden_dims].set(wh)              # hidden weight (W x H)
    w = w.at[wp:wp + hidden_dims, :n_actions].set(wo)  # out weight   (H x A)
    return vec, w, dict(wp=wp, hp=hp, ap=ap)


def _pick_tile(b, block_b):
    """Batch tile: big (amortize per-step overhead) but >=2 grid steps when
    possible so the 'parallel' axis can feed both v7x TensorCores."""
    b_pad8 = _round_up(b, _SUBLANE)
    if b_pad8 <= _SUBLANE:
        tb = b_pad8
    else:
        tb = min(block_b, _round_up(pl.cdiv(b_pad8, 2), _SUBLANE))
    b_pad = _round_up(b, tb)
    return tb, b_pad


@functools.partial(jax.jit,
                   static_argnames=("wp", "hp", "ap", "n_actions", "block_b"))
def dqn_forward(time_idx, vol, vec_slab, w_slab, *,
                wp, hp, ap, n_actions, block_b=1024):
    b = time_idx.shape[0]
    out_cols = _round_up(n_actions, _SUBLANE)      # narrow lane-dense output

    t = time_idx.astype(jnp.int32).reshape(b, 1)   # (B, 1) int32
    v = vol.astype(jnp.float32).reshape(b, 1)      # (B, 1) f32

    tb, b_pad = _pick_tile(b, block_b)
    if b_pad != b:
        # Padded rows produce garbage scores (t=0 fires the one-hot); they are
        # sliced off below -- never consume the raw kernel output.
        t = jnp.pad(t, ((0, b_pad - b), (0, 0)))
        v = jnp.pad(v, ((0, b_pad - b), (0, 0)))

    kernel = functools.partial(_dqn_kernel, wp=wp, hp=hp, ap=ap,
                               out_cols=out_cols)
    out = pl.pallas_call(
        kernel,
        out_shape=jax.ShapeDtypeStruct((b_pad, out_cols), jnp.float32),
        grid=(b_pad // tb,),
        in_specs=[
            pl.BlockSpec((tb, 1), lambda i: (i, 0)),           # time indices
            pl.BlockSpec((tb, 1), lambda i: (i, 0)),           # volumes
            pl.BlockSpec(vec_slab.shape, lambda i: (0, 0)),    # resident params
            pl.BlockSpec(w_slab.shape, lambda i: (0, 0)),      # resident params
        ],
        out_specs=pl.BlockSpec((tb, out_cols), lambda i: (i, 0)),
        compiler_params=pltpu.CompilerParams(
            dimension_semantics=("parallel",)),
    )(t, v, vec_slab, w_slab)
    return out[:b, :n_actions]


def init_params(key, embed_dims, time_dims, hidden_dims, n_actions):
    """Deterministic synthetic init (PyTorch-style uniform(-1/sqrt(fan_in)))."""
    ks = jax.random.split(key, 6)
    in_hidden = time_dims + embed_dims + 1

    def u(k, shape, fan_in):
        bound = 1.0 / jnp.sqrt(jnp.float32(fan_in))
        return jax.random.uniform(k, shape, jnp.float32, -bound, bound)

    # weights stored transposed relative to PyTorch (in_features, out_features)
    we = u(ks[0], (1, embed_dims), 1)
    be = u(ks[1], (embed_dims,), 1)
    wh = u(ks[2], (in_hidden, hidden_dims), in_hidden)
    bh = u(ks[3], (hidden_dims,), in_hidden)
    wo = u(ks[4], (hidden_dims, n_actions), hidden_dims)
    bo = u(ks[5], (n_actions,), hidden_dims)
    return we, be, wh, bh, wo, bo


if __name__ == "__main__":
    # module-consistent sizes; a small batch of RL states in one call
    embed_dims, time_dims, hidden_dims, n_actions = 8, 16, 32, 4
    batch = 100   # non-multiple of the tile -> exercises padding + 2-step grid

    key = jax.random.PRNGKey(0)
    k_params, k_time, k_vol = jax.random.split(key, 3)

    we, be, wh, bh, wo, bo = init_params(
        k_params, embed_dims, time_dims, hidden_dims, n_actions)
    vec_slab, w_slab, pads = pack_params(
        we, be, wh, bh, wo, bo, time_dims=time_dims, embed_dims=embed_dims,
        hidden_dims=hidden_dims, n_actions=n_actions)

    # Synthetic "state": Timer(start=0, interval=1, end=time_dims) so the
    # time index lies in [0, time_dims]; volume is a scalar per state.
    time_idx = jax.random.randint(k_time, (batch,), 0, time_dims + 1)
    vol = jax.random.uniform(k_vol, (batch,), jnp.float32)

    out = dqn_forward(time_idx, vol, vec_slab, w_slab,
                      wp=pads["wp"], hp=pads["hp"], ap=pads["ap"],
                      n_actions=n_actions)
    jax.block_until_ready(out)

    # Reference: plain-JAX transcription of the PyTorch forward.
    t_onehot = jax.nn.one_hot(time_idx, time_dims + 1, dtype=jnp.float32)
    v_vec = vol.reshape(batch, 1)
    v_embed = v_vec @ we + be[None, :]
    inp = jnp.concatenate([t_onehot, v_embed], axis=1)
    ref = jax.nn.sigmoid(inp @ wh + bh[None, :]) @ wo + bo[None, :]

    assert out.shape == (batch, n_actions)
    assert jnp.allclose(out, ref, atol=1e-4, rtol=1e-4), (
        "max abs err: %f" % float(jnp.max(jnp.abs(out - ref))))

    print("KERNEL_OK")
</pallas_src>

<mosaic_0001>
module attributes {stable_mosaic.version = 11 : i64} {
  func.func @_dqn_kernel(%arg0: i32, %arg1: memref<56x1xi32, #tpu.memory_space<vmem>>, %arg2: memref<56x1xf32, #tpu.memory_space<vmem>>, %arg3: memref<8x128xf32, #tpu.memory_space<vmem>>, %arg4: memref<256x128xf32, #tpu.memory_space<vmem>>, %arg5: memref<56x8xf32, #tpu.memory_space<vmem>>) attributes {dimension_semantics = [#tpu.dimension_semantics<parallel>], iteration_bounds = array<i64: 2>, scalar_prefetch = 0 : i64, scratch_operands = 0 : i64, tpu.core_type = #tpu.core_type<tc>, window_params = [{transform_indices = @transform_0, window_bounds = array<i64: 56, 1>}, {transform_indices = @transform_1, window_bounds = array<i64: 56, 1>}, {pipeline_mode = #tpu.pipeline_mode<synchronous>, transform_indices = @transform_2, window_bounds = array<i64: 8, 128>}, {pipeline_mode = #tpu.pipeline_mode<synchronous>, transform_indices = @transform_3, window_bounds = array<i64: 256, 128>}, {transform_indices = @transform_4, window_bounds = array<i64: 56, 8>}]} {
    %c0 = arith.constant 0 : index
    %c0_0 = arith.constant 0 : index
    %0 = vector.load %arg1[%c0, %c0_0] : memref<56x1xi32, #tpu.memory_space<vmem>>, vector<56x1xi32>
    %c0_1 = arith.constant 0 : index
    %c0_2 = arith.constant 0 : index
    %1 = vector.load %arg2[%c0_1, %c0_2] : memref<56x1xf32, #tpu.memory_space<vmem>>, vector<56x1xf32>
    %c0_3 = arith.constant 0 : index
    %c0_4 = arith.constant 0 : index
    %2 = vector.load %arg3[%c0_3, %c0_4] : memref<8x128xf32, #tpu.memory_space<vmem>>, vector<1x128xf32>
    %c1 = arith.constant 1 : index
    %c0_5 = arith.constant 0 : index
    %3 = vector.load %arg3[%c1, %c0_5] : memref<8x128xf32, #tpu.memory_space<vmem>>, vector<1x128xf32>
    %c2 = arith.constant 2 : index
    %c0_6 = arith.constant 0 : index
    %4 = vector.load %arg3[%c2, %c0_6] : memref<8x128xf32, #tpu.memory_space<vmem>>, vector<1x128xf32>
    %c3 = arith.constant 3 : index
    %c0_7 = arith.constant 0 : index
    %5 = vector.load %arg3[%c3, %c0_7] : memref<8x128xf32, #tpu.memory_space<vmem>>, vector<1x128xf32>
    %6 = tpu.iota {dimensions = array<i32: 1>} : vector<56x128xi32>
    %7 = vector.broadcast %0 : vector<56x1xi32> to vector<56x128xi32>
    %8 = arith.cmpi eq, %6, %7 : vector<56x128xi32>
    %9 = arith.extui %8 : vector<56x128xi1> to vector<56x128xi32>
    %10 = arith.sitofp %9 : vector<56x128xi32> to vector<56x128xf32>
    %11 = vector.broadcast %1 : vector<56x1xf32> to vector<56x128xf32>
    %12 = vector.broadcast %2 : vector<1x128xf32> to vector<56x128xf32>
    %13 = arith.mulf %11, %12 : vector<56x128xf32>
    %14 = arith.addf %10, %13 : vector<56x128xf32>
    %15 = vector.broadcast %3 : vector<1x128xf32> to vector<56x128xf32>
    %16 = arith.addf %14, %15 : vector<56x128xf32>
    %c0_8 = arith.constant 0 : index
    %c0_9 = arith.constant 0 : index
    %17 = vector.load %arg4[%c0_8, %c0_9] : memref<256x128xf32, #tpu.memory_space<vmem>>, vector<128x128xf32>
    %c128 = arith.constant 128 : index
    %c0_10 = arith.constant 0 : index
    %18 = vector.load %arg4[%c128, %c0_10] : memref<256x128xf32, #tpu.memory_space<vmem>>, vector<128x128xf32>
    %cst = arith.constant dense<0.000000e+00> : vector<56x128xf32>
    %19 = tpu.matmul %16, %17, %cst {dimension_numbers = #tpu.dot_dimension_numbers<[1], [0], [0], [1], [0, 0, 1, 1], [], []>} : vector<56x128xf32>, vector<128x128xf32>, vector<56x128xf32> -> vector<56x128xf32>
    %20 = vector.broadcast %4 : vector<1x128xf32> to vector<56x128xf32>
    %21 = arith.addf %19, %20 : vector<56x128xf32>
    %22 = arith.negf %21 : vector<56x128xf32>
    %23 = math.exp %22 : vector<56x128xf32>
    %cst_11 = arith.constant 1.000000e+00 : f32
    %24 = vector.broadcast %cst_11 : f32 to vector<56x128xf32>
    %25 = arith.addf %24, %23 : vector<56x128xf32>
    %26 = arith.divf %24, %25 : vector<56x128xf32>
    %cst_12 = arith.constant dense<0.000000e+00> : vector<56x128xf32>
    %27 = tpu.matmul %26, %18, %cst_12 {dimension_numbers = #tpu.dot_dimension_numbers<[1], [0], [0], [1], [0, 0, 1, 1], [], []>} : vector<56x128xf32>, vector<128x128xf32>, vector<56x128xf32> -> vector<56x128xf32>
    %28 = vector.broadcast %5 : vector<1x128xf32> to vector<56x128xf32>
    %29 = arith.addf %27, %28 : vector<56x128xf32>
    %30 = vector.extract_strided_slice %29 {offsets = [0, 0], sizes = [56, 8], strides = [1, 1]} : vector<56x128xf32> to vector<56x8xf32>
    %c0_13 = arith.constant 0 : index
    %c0_14 = arith.constant 0 : index
    %31 = vector.load %arg5[%c0_13, %c0_14] : memref<56x8xf32, #tpu.memory_space<vmem>>, vector<56x8xf32>
    tpu.vector_store %arg5[%c0_13, %c0_14], %30 {strides = array<i32>} : memref<56x8xf32, #tpu.memory_space<vmem>>, vector<56x8xf32>,
    return
  }
  func.func @transform_0(%arg0: i32) -> (i32, i32) {
    %c0_i32 = arith.constant 0 : i32
    %c0_i32_0 = arith.constant 0 : i32
    return %arg0, %c0_i32 : i32, i32
  }
  func.func @transform_1(%arg0: i32) -> (i32, i32) {
    %c0_i32 = arith.constant 0 : i32
    %c0_i32_0 = arith.constant 0 : i32
    return %arg0, %c0_i32 : i32, i32
  }
  func.func @transform_2(%arg0: i32) -> (i32, i32) {
    %c0_i32 = arith.constant 0 : i32
    %c0_i32_0 = arith.constant 0 : i32
    %c0_i32_1 = arith.constant 0 : i32
    return %c0_i32, %c0_i32_0 : i32, i32
  }
  func.func @transform_3(%arg0: i32) -> (i32, i32) {
    %c0_i32 = arith.constant 0 : i32
    %c0_i32_0 = arith.constant 0 : i32
    %c0_i32_1 = arith.constant 0 : i32
    return %c0_i32, %c0_i32_0 : i32, i32
  }
  func.func @transform_4(%arg0: i32) -> (i32, i32) {
    %c0_i32 = arith.constant 0 : i32
    %c0_i32_0 = arith.constant 0 : i32
    return %arg0, %c0_i32 : i32, i32
  }
}

</mosaic_0001>

<bundles_post_ra>
// kernel: dqn_forward.1
= control target key start
LH: loop header
LB: loop body
LE: loop exit
PB: predicated region body
PF: predicated region fallthrough
CT: control target
= control target key end

     0   :  { %s798_s15 = smov 0   ;;  %s994_s0 = inlined_call_operand.vmem [shape: s32[112,1], index: 0, kind: input, shape index: {}]   ;;  %s995_s1 = inlined_call_operand.vmem [shape: f32[112,1], index: 1, kind: input, shape index: {}]   ;;  %s996_s2 = inlined_call_operand.vmem [shape: f32[8,128], index: 2, kind: input, shape index: {}]   ;;  %s997_s3 = inlined_call_operand.vmem [shape: f32[256,128], index: 3, kind: input, shape index: {}]   ;;  %s998_s4 = inlined_call_operand.vmem [shape: f32[112,8], index: 4, kind: output, shape index: {}]  }
   0x1 LB: > { %s662_s16 = sadd.s32 4294967295, %s769_s15   ;;  %p666_p0 = scmp.ge.s32.totalorder %s769_s15, 1  ;;  %s769_s15 = sphi %s798_s15, %s14_s15  }
   0x2   : > { %p174_p1 = scmp.lt.s32.totalorder %s769_s15, 3 }
   0x4   : > { %p175_p2 = pnand %p666_p0, %p174_p1 }
   0x5   : > { %s205_s17 = smul.u32 (!%p175_p2), 7, %s662_s16 }
   0x6   : > { %178 = sbr.rel (%p175_p2) target bundleno = 465 (0x1d1), region = 36 }
   0x7   : > { %p206_p3 = scmp.lt.s32.totalorder (!%p175_p2), %s205_s17, 13 }
   0xb   : > { %v771_v0 = vmov 0   ;;  %s1000_s17 = smov (!%p206_p3, %s205_s17), 13  ;;  %v358_v4 = vld [vmem:[%s997_s3 + $0x78] sm:$0xff]  ;;  %v357_v5 = vld [vmem:[%s997_s3 + $0x70] sm:$0xff]  ;;  %v356_v9 = vld [vmem:[%s997_s3 + $0x68] sm:$0xff]  ;;  %v241_v31 = vlaneseq  ;;  %v772_v35 = vmov 0.0  }
   0xc   : > { %729 = vset.pattern.permute.xlu1 %v771_v0  ;;  %728 = vset.pattern.permute.xlu0 %v771_v0  ;;  %s806_s18 = sshll.u32 %s1000_s17, 3  ;;  %v355_v10 = vld [vmem:[%s997_s3 + $0x60] sm:$0xff]  ;;  %v354_v11 = vld [vmem:[%s997_s3 + $0x58] sm:$0xff]  ;;  %v353_v12 = vld [vmem:[%s997_s3 + $0x50] sm:$0xff] }
   0xd   : > { %730 = vset.pattern.permute.xlu2 %v771_v0  ;;  %s812_s21 = scalar_lea.vmem %s994_s0, %s806_s18  ;;  %s821_s24 = scalar_lea.vmem %s995_s1, %s806_s18  ;;  %376 = vmatpush.msra.mxu0 %v358_v4  ;;  %v352_v16 = vld [vmem:[%s997_s3 + $0x48] sm:$0xff]  ;;  %v351_v22 = vld [vmem:[%s997_s3 + $0x40] sm:$0xff]  ;;  %v350_v23 = vld [vmem:[%s997_s3 + $0x38] sm:$0xff]  ;;  %v242_v33 = vand.u32 127, %v241_v31 }
   0xe   : > { %v227_v1 = vld [vmem:[%s812_s21 + $0x20] sm:$0xff]  ;;  %v226_v2 = vld [vmem:[%s812_s21 + $0x18] sm:$0xff]  ;;  %686 = vmatpush.msra.mxu2 %v358_v4  ;;  %v235_v13 = vld [vmem:[%s821_s24 + $0x28] sm:$0xff]  ;;  %s221_s27 = scalar_lea.vmem %s998_s4, %s806_s18 }
   0xf   : > { %256 = vperm.xlu1 %729, %v227_v1   ;;  %253 = vperm.xlu0 %728, %v226_v2   ;;  %v223_v3 = vld [vmem:[%s812_s21] sm:$0xff]  ;;  %v233_v7 = vld [vmem:[%s821_s24 + $0x18] sm:$0xff]  ;;  %v228_v14 = vld [vmem:[%s812_s21 + $0x28] sm:$0xff] }
  0x10   : > { %244 = vperm.xlu2 %730, %v223_v3   ;;  %v234_v6 = vld [vmem:[%s821_s24 + $0x20] sm:$0xff]  ;;  %377 = vmatpush.msra.mxu0 %v357_v5  ;;  %v224_v15 = vld [vmem:[%s812_s21 + $0x8] sm:$0xff]  ;;  %v229_v17 = vld [vmem:[%s812_s21 + $0x30] sm:$0xff] }
  0x11   : > { %v230_v8 = vld [vmem:[%s821_s24] sm:$0xff]  ;;  %687 = vmatpush.msra.mxu2 %v357_v5  ;;  %v231_v18 = vld [vmem:[%s821_s24 + $0x8] sm:$0xff]  ;;  %v236_v19 = vld [vmem:[%s821_s24 + $0x30] sm:$0xff] }
  0x12   : > { %378 = vmatpush.msra.mxu0 %v356_v9  ;;  %v232_v20 = vld [vmem:[%s821_s24 + $0x10] sm:$0xff]  ;;  %v348_v25 = vld [vmem:[%s997_s3 + $0x28] sm:$0xff]  ;;  %v347_v26 = vld [vmem:[%s997_s3 + $0x20] sm:$0xff] }
  0x13   : > { %688 = vmatpush.msra.mxu2 %v356_v9  ;;  %v225_v21 = vld [vmem:[%s812_s21 + $0x10] sm:$0xff]  ;;  %v346_v27 = vld [vmem:[%s997_s3 + $0x18] sm:$0xff]  ;;  %v344_v29 = vld [vmem:[%s997_s3 + $0x8] sm:$0xff] }
  0x14   : > { %379 = vmatpush.msra.mxu0 %v355_v10  ;;  %v349_v24 = vld [vmem:[%s997_s3 + $0x30] sm:$0xff]  ;;  %v343_v30 = vld [vmem:[%s997_s3] sm:$0xff] }
  0x15   : > { %689 = vmatpush.msra.mxu2 %v355_v10  ;;  %v345_v28 = vld [vmem:[%s997_s3 + $0x10] sm:$0xff]  ;;  %v731_v34 = vld [vmem:[%s996_s2] ss:$0 sm:$0xff]  ;;  %v732_v39 = vld [vmem:[%s996_s2 + $0x1] ss:$0 sm:$0xff] }
  0x16   : > { %380 = vmatpush.msra.mxu0 %v354_v11  ;;  %v361_v31 = vld [vmem:[%s997_s3 + $0x90] sm:$0xff] }
  0x17   : > { %307 = vperm.xlu1 %729, %v234_v6   ;;  %302 = vperm.xlu0 %728, %v233_v7  }
  0x18   : > { %287 = vperm.xlu2 %730, %v230_v8   ;;  %690 = vmatpush.msra.mxu2 %v354_v11 }
  0x19   : > { %381 = vmatpush.msra.mxu0 %v353_v12 }
  0x1a   : > { %691 = vmatpush.msra.mxu2 %v353_v12 }
  0x1b   : > { %382 = vmatpush.msra.mxu0 %v352_v16 }
  0x1c   : > { %692 = vmatpush.msra.mxu2 %v352_v16  ;;  %v372_v16 = vld [vmem:[%s997_s3 + $0xe8] sm:$0xff] }
  0x1d   : > { %383 = vmatpush.msra.mxu0 %v351_v22 }
  0x1e   : > { %693 = vmatpush.msra.mxu2 %v351_v22  ;;  %v366_v22 = vld [vmem:[%s997_s3 + $0xb8] sm:$0xff] }
  0x1f   : > { %312 = vperm.xlu1 %729, %v235_v13   ;;  %259 = vperm.xlu0 %728, %v228_v14   ;;  %v374_v14 = vld [vmem:[%s997_s3 + $0xf8] sm:$0xff] }
  0x20   : > { %247 = vperm.xlu2 %730, %v224_v15   ;;  %384 = vmatpush.msra.mxu0 %v350_v23  ;;  %v373_v15 = vld [vmem:[%s997_s3 + $0xf0] sm:$0xff] }
  0x21   : > { %694 = vmatpush.msra.mxu2 %v350_v23  ;;  %548 = vmatpush.msra.mxu1 %v374_v14  ;;  %v365_v23 = vld [vmem:[%s997_s3 + $0xb0] sm:$0xff] }
  0x22   : > { %385 = vmatpush.msra.mxu0 %v349_v24  ;;  %702 = vmatpush.msra.mxu3 %v374_v14 }
  0x23   : > { %695 = vmatpush.msra.mxu2 %v349_v24  ;;  %549 = vmatpush.msra.mxu1 %v373_v15  ;;  %v921_v24 = vld [vmem:[%s996_s2 + $0x2] ss:$0 sm:$0xff] }
  0x24   : > { %386 = vmatpush.msra.mxu0 %v348_v25  ;;  %703 = vmatpush.msra.mxu3 %v373_v15 }
  0x25   : > { %696 = vmatpush.msra.mxu2 %v348_v25  ;;  %550 = vmatpush.msra.mxu1 %v372_v16  ;;  %v364_v25 = vld [vmem:[%s997_s3 + $0xa8] sm:$0xff] }
  0x26   : > { %387 = vmatpush.msra.mxu0 %v347_v26  ;;  %704 = vmatpush.msra.mxu3 %v372_v16 }
  0x27   : > { %262 = vperm.xlu1 %729, %v229_v17   ;;  %292 = vperm.xlu0 %728, %v231_v18   ;;  %v371_v17 = vld [vmem:[%s997_s3 + $0xe0] sm:$0xff]  ;;  %v370_v18 = vld [vmem:[%s997_s3 + $0xd8] sm:$0xff] }
  0x28   : > { %317 = vperm.xlu2 %730, %v236_v19   ;;  %697 = vmatpush.msra.mxu2 %v347_v26  ;;  %v369_v19 = vld [vmem:[%s997_s3 + $0xd0] sm:$0xff]  ;;  %v363_v26 = vld [vmem:[%s997_s3 + $0xa0] sm:$0xff] }
  0x29   : > { %388 = vmatpush.msra.mxu0 %v346_v27  ;;  %551 = vmatpush.msra.mxu1 %v371_v17 }
  0x2a   : > { %698 = vmatpush.msra.mxu2 %v346_v27  ;;  %705 = vmatpush.msra.mxu3 %v371_v17 }
  0x2b   : > { %389 = vmatpush.msra.mxu0 %v345_v28  ;;  %552 = vmatpush.msra.mxu1 %v370_v18 }
  0x2c   : > { %699 = vmatpush.msra.mxu2 %v345_v28  ;;  %706 = vmatpush.msra.mxu3 %v370_v18 }
  0x2d   : > { %390 = vmatpush.msra.mxu0 %v344_v29  ;;  %553 = vmatpush.msra.mxu1 %v369_v19 }
  0x2e   : > { %700 = vmatpush.msra.mxu2 %v344_v29  ;;  %707 = vmatpush.msra.mxu3 %v369_v19  ;;  %v362_v29 = vld [vmem:[%s997_s3 + $0x98] sm:$0xff] }
  0x2f   : > { %297 = vperm.xlu1 %729, %v232_v20   ;;  %250 = vperm.xlu0 %728, %v225_v21   ;;  %v368_v20 = vld [vmem:[%s997_s3 + $0xc8] sm:$0xff]  ;;  %v367_v21 = vld [vmem:[%s997_s3 + $0xc0] sm:$0xff] }
  0x30   : > { %391 = vmatpush.msra.mxu0 %v343_v30  ;;  %701 = vmatpush.msra.mxu2 %v343_v30 }
  0x31   : > { %554 = vmatpush.msra.mxu1 %v368_v20  ;;  %708 = vmatpush.msra.mxu3 %v368_v20 }
  0x33   : > { %555 = vmatpush.msra.mxu1 %v367_v21  ;;  %709 = vmatpush.msra.mxu3 %v367_v21 }
  0x35   : > { %556 = vmatpush.msra.mxu1 %v366_v22  ;;  %710 = vmatpush.msra.mxu3 %v366_v22 }
  0x37   : > { %557 = vmatpush.msra.mxu1 %v365_v23  ;;  %711 = vmatpush.msra.mxu3 %v365_v23 }
  0x39   : > { %558 = vmatpush.msra.mxu1 %v364_v25  ;;  %712 = vmatpush.msra.mxu3 %v364_v25 }
  0x3b   : > { %559 = vmatpush.msra.mxu1 %v363_v26  ;;  %713 = vmatpush.msra.mxu3 %v363_v26 }
  0x3d   : > { %560 = vmatpush.msra.mxu1 %v362_v29  ;;  %714 = vmatpush.msra.mxu3 %v362_v29 }
  0x3f   : > { %561 = vmatpush.msra.mxu1 %v361_v31  ;;  %715 = vmatpush.msra.mxu3 %v361_v31 }
  0x6a   : > { %v245_v32 = vpop.permute.xlu2 %244 }
  0x6b   : > { %vm264_vm0 = vcmp.eq.s32.totalorder %v242_v33, %v245_v32  ;;  %v360_v32 = vld [vmem:[%s997_s3 + $0x88] sm:$0xff] }
  0x6c   : > { %v670_v36 = vsel %vm264_vm0, 1.0, %v772_v35  ;;  %562 = vmatpush.msra.mxu1 %v360_v32  ;;  %716 = vmatpush.msra.mxu3 %v360_v32 }
  0x72   : > { %v288_v37 = vpop.permute.xlu2 %287 }
  0x73   : > { %v321_v38 = vmul.f32 %v731_v34, %v288_v37 }
  0x75   : > { %v328_v40 = vadd.f32 %v670_v36, %v321_v38 }
  0x77   : > { %v336_v41 = vadd.f32 %v732_v39, %v328_v40 }
  0x79   : > { %392 = vmatmul.f32.vlgmr.msra.gmra.mxu0 %v336_v41 }
  0x7a   : > { %v248_v55 = vpop.permute.xlu2 %247 }
  0x7b   : > { %vm265_vm4 = vcmp.eq.s32.totalorder %v242_v33, %v248_v55 }
  0x7c   : > { %v671_v63 = vsel %vm265_vm4, 1.0, %v772_v35 }
  0x81   : > { %v257_v42 = vpop.permute.xlu1 %256  ;;  %v254_v43 = vpop.permute.xlu0 %253 }
  0x82   : > { %vm267_vm1 = vcmp.eq.s32.totalorder %v242_v33, %v254_v43  ;;  %vm268_vm2 = vcmp.eq.s32.totalorder %v242_v33, %v257_v42  ;;  %v318_v1 = vpop.permute.xlu2 %317 }
  0x83   : > { %v673_v47 = vsel %vm267_vm1, 1.0, %v772_v35  ;;  %v674_v51 = vsel %vm268_vm2, 1.0, %v772_v35  ;;  %v327_v5 = vmul.f32 %v731_v34, %v318_v1 }
  0x89   : > { %v308_v44 = vpop.permute.xlu1 %307  ;;  %v303_v45 = vpop.permute.xlu0 %302 }
  0x8a   : > { %v324_v46 = vmul.f32 %v731_v34, %v303_v45  ;;  %v325_v49 = vmul.f32 %v731_v34, %v308_v44 }
  0x8c   : > { %v331_v48 = vadd.f32 %v673_v47, %v324_v46  ;;  %v332_v54 = vadd.f32 %v674_v51, %v325_v49 }
  0x8e   : > { %v339_v50 = vadd.f32 %v732_v39, %v331_v48  ;;  %v340_v57 = vadd.f32 %v732_v39, %v332_v54 }
  0x90   : > { %401 = vmatmul.f32.vlgmr.msra.gmra.mxu2 %v339_v50 }
  0x91   : > { %v313_v52 = vpop.permute.xlu1 %312  ;;  %v260_v53 = vpop.permute.xlu0 %259 }
  0x92   : > { %vm269_vm3 = vcmp.eq.s32.totalorder %v242_v33, %v260_v53  ;;  %v326_v56 = vmul.f32 %v731_v34, %v313_v52 }
  0x93   : > { %v675_v58 = vsel %vm269_vm3, 1.0, %v772_v35 }
  0x94   : > { %v333_v61 = vadd.f32 %v675_v58, %v326_v56 }
  0x96   : > { %v341_v3 = vadd.f32 %v732_v39, %v333_v61 }
  0x98   : > { %404 = vmatmul.f32.gmra.mxu2 %v340_v57 }
  0x99   : > { %v263_v59 = vpop.permute.xlu1 %262  ;;  %v293_v60 = vpop.permute.xlu0 %292 }
  0x9a   : > { %v322_v62 = vmul.f32 %v731_v34, %v293_v60  ;;  %vm270_vm5 = vcmp.eq.s32.totalorder %v242_v33, %v263_v59 }
  0x9b   : > { %v676_v4 = vsel %vm270_vm5, 1.0, %v772_v35 }
  0x9c   : > { %v329_v0 = vadd.f32 %v671_v63, %v322_v62  ;;  %v334_v8 = vadd.f32 %v676_v4, %v327_v5 }
  0x9e   : > { %v337_v2 = vadd.f32 %v732_v39, %v329_v0  ;;  %v342_v13 = vadd.f32 %v732_v39, %v334_v8 }
  0xa0   : > { %395 = vmatmul.f32.gmra.mxu0 %v337_v2  ;;  %407 = vmatmul.f32.gmra.mxu2 %v341_v3 }
  0xa1   : > { %v298_v6 = vpop.permute.xlu1 %297  ;;  %v251_v7 = vpop.permute.xlu0 %250 }
  0xa2   : > { %v323_v9 = vmul.f32 %v731_v34, %v298_v6  ;;  %vm266_vm6 = vcmp.eq.s32.totalorder %v242_v33, %v251_v7  ;;  %v359_v33 = vld [vmem:[%s997_s3 + $0x80] sm:$0xff] }
  0xa3   : > { %v672_v10 = vsel %vm266_vm6, 1.0, %v772_v35  ;;  %563 = vmatpush.msra.mxu1 %v359_v33  ;;  %717 = vmatpush.msra.mxu3 %v359_v33 }
  0xa4   : > { %v330_v11 = vadd.f32 %v672_v10, %v323_v9 }
  0xa6   : > { %v338_v12 = vadd.f32 %v732_v39, %v330_v11 }
  0xa8   : > { %398 = vmatmul.f32.gmra.mxu0 %v338_v12  ;;  %410 = vmatmul.f32.gmra.mxu2 %v342_v13 }
  0xf6   : > { %v393_v27 = vpop.f32.mrf.mxu0 }
  0xf7   : > { %v394_v28 = vadd.f32 %v921_v24, %v393_v27 }
  0xf9   : > { %v677_v30 = vmul.f32 -1.442695, %v394_v28 }
  0xfb   : > { %735 = vpow2.f32 %v677_v30 }
 0x101   : > { %v736_v34 = vpop.eup %735 }
 0x102   : > { %v435_v35 = vadd.f32 1.0, %v736_v34 }
 0x104   : > { %737 = vrcp.f32 %v435_v35  ;;  %v453_v38 = vand.u32 2147483648, %v435_v35  ;;  %vm447_vm7 = vweird.f32 %v435_v35  ;;  %v451_v40 = vand.u32 2147483647, %v435_v35 }
 0x106   : > { %v454_v42 = vor.u32 1.1754944e-38, %v453_v38  ;;  %vm452_vm10 = vcmp.eq.f32.partialorder %v451_v40, 8.507059e+37 }
 0x10a   : > { %v738_v36 = vpop.eup %737 }
 0x10b   : > { %v443_v37 = vmul.f32 %v738_v36, %v435_v35  ;;  %vm448_vm8 = vweird.f32 %v738_v36 }
 0x10c   : > { %vm449_vm9 = vmor %vm447_vm7, %vm448_vm8 }
 0x10d   : > { %v444_v39 = vsub.f32 1.0, %v443_v37 }
 0x10f   : > { %v445_v41 = vmul.f32 %v738_v36, %v444_v39 }
 0x111   : > { %v446_v43 = vadd.f32 %v738_v36, %v445_v41 }
 0x113   : > { %v402_v44 = vpop.f32.mrf.mxu2  ;;  %v450_v45 = vsel %vm449_vm9, %v738_v36, %v446_v43 }
 0x114   : > { %v455_v46 = vsel %vm452_vm10, %v454_v42, %v450_v45  ;;  %v403_v47 = vadd.f32 %v921_v24, %v402_v44 }
 0x115   : > { %564 = vmatmul.f32.vlgmr.msra.gmra.mxu1 %v455_v46 }
 0x116   : > { %v680_v50 = vmul.f32 -1.442695, %v403_v47 }
 0x11b   : > { %v405_v48 = vpop.f32.mrf.mxu2 }
 0x11c   : > { %v406_v49 = vadd.f32 %v921_v24, %v405_v48 }
 0x11d   : > { %v396_v51 = vpop.f32.mrf.mxu0 }
 0x11e   : > { %v681_v52 = vmul.f32 -1.442695, %v406_v49  ;;  %v397_v53 = vadd.f32 %v921_v24, %v396_v51 }
 0x120   : > { %739 = vpow2.f32 %v681_v52  ;;  %v678_v54 = vmul.f32 -1.442695, %v397_v53 }
 0x121   : > { %741 = vpow2.f32 %v680_v50 }
 0x122   : > { %743 = vpow2.f32 %v678_v54 }
 0x123   : > { %v408_v55 = vpop.f32.mrf.mxu2 }
 0x124   : > { %v409_v56 = vadd.f32 %v921_v24, %v408_v55 }
 0x125   : > { %v399_v57 = vpop.f32.mrf.mxu0 }
 0x126   : > { %v740_v58 = vpop.eup %739  ;;  %v682_v59 = vmul.f32 -1.442695, %v409_v56  ;;  %v400_v60 = vadd.f32 %v921_v24, %v399_v57 }
 0x127   : > { %v742_v61 = vpop.eup %741  ;;  %v439_v62 = vadd.f32 1.0, %v740_v58 }
 0x128   : > { %v744_v63 = vpop.eup %743  ;;  %745 = vpow2.f32 %v682_v59  ;;  %v679_v0 = vmul.f32 -1.442695, %v400_v60  ;;  %v947_v2 = vadd.f32 1.0, %v742_v61 }
 0x129   : > { %747 = vrcp.f32 %v439_v62  ;;  %v436_v1 = vadd.f32 1.0, %v744_v63  ;;  %v511_v15 = vand.u32 2147483647, %v439_v62  ;;  %v513_v16 = vand.u32 2147483648, %v439_v62 }
 0x12a   : > { %749 = vpow2.f32 %v679_v0  ;;  %vm507_vm12 = vweird.f32 %v439_v62  ;;  %v498_v63 = vand.u32 2147483648, %v947_v2 }
 0x12b   : > { %751 = vrcp.f32 %v436_v1  ;;  %v411_v3 = vpop.f32.mrf.mxu2  ;;  %v468_v20 = vand.u32 2147483648, %v436_v1  ;;  %vm512_vm15 = vcmp.eq.f32.partialorder %v511_v15, 8.507059e+37  ;;  %v514_v27 = vor.u32 1.1754944e-38, %v513_v16 }
 0x12c   : > { %v412_v4 = vadd.f32 %v921_v24, %v411_v3  ;;  %753 = vrcp.f32 %v947_v2  ;;  %v466_v24 = vand.u32 2147483647, %v436_v1  ;;  %vm462_vm0 = vweird.f32 %v436_v1 }
 0x12d   : > { %v469_v34 = vor.u32 1.1754944e-38, %v468_v20 }
 0x12e   : > { %v746_v5 = vpop.eup %745  ;;  %v683_v6 = vmul.f32 -1.442695, %v412_v4  ;;  %vm467_vm2 = vcmp.eq.f32.partialorder %v466_v24, 8.507059e+37 }
 0x12f   : > { %v748_v7 = vpop.eup %747  ;;  %v440_v8 = vadd.f32 1.0, %v746_v5 }
 0x130   : > { %v750_v9 = vpop.eup %749  ;;  %755 = vpow2.f32 %v683_v6  ;;  %v503_v10 = vmul.f32 %v748_v7, %v439_v62  ;;  %vm508_vm11 = vweird.f32 %v748_v7 }
 0x131   : > { %v752_v11 = vpop.eup %751  ;;  %757 = vrcp.f32 %v440_v8  ;;  %v951_v12 = vadd.f32 1.0, %v750_v9  ;;  %vm509_vm14 = vmor %vm507_vm12, %vm508_vm11  ;;  %v526_v39 = vand.u32 2147483647, %v440_v8  ;;  %v528_v40 = vand.u32 2147483648, %v440_v8  ;;  %v734_v9 = vld [vmem:[%s996_s2 + $0x3] ss:$0 sm:$0xff] }
 0x132   : > { %v504_v13 = vsub.f32 1.0, %v503_v10  ;;  %v458_v14 = vmul.f32 %v752_v11, %v436_v1  ;;  %v954_v17 = vpop.eup %753  ;;  %vm463_vm13 = vweird.f32 %v752_v11  ;;  %vm522_vm4 = vweird.f32 %v440_v8 }
 0x133   : > { %759 = vrcp.f32 %v951_v12  ;;  %v488_v28 = vmul.f32 %v954_v17, %v947_v2  ;;  %vm464_vm1 = vmor %vm462_vm0, %vm463_vm13  ;;  %v483_v44 = vand.u32 2147483648, %v951_v12  ;;  %v481_v47 = vand.u32 2147483647, %v951_v12 }
 0x134   : > { %v505_v18 = vmul.f32 %v748_v7, %v504_v13  ;;  %v459_v19 = vsub.f32 1.0, %v458_v14  ;;  %vm527_vm7 = vcmp.eq.f32.partialorder %v526_v39, 8.507059e+37  ;;  %v529_v49 = vor.u32 1.1754944e-38, %v528_v40 }
 0x135   : > { %v489_v41 = vsub.f32 1.0, %v488_v28  ;;  %vm477_vm8 = vweird.f32 %v951_v12  ;;  %v484_v55 = vor.u32 1.1754944e-38, %v483_v44  ;;  %vm482_vm10 = vcmp.eq.f32.partialorder %v481_v47, 8.507059e+37 }
 0x136   : > { %v756_v21 = vpop.eup %755  ;;  %v506_v22 = vadd.f32 %v748_v7, %v505_v18  ;;  %v460_v23 = vmul.f32 %v752_v11, %v459_v19  ;;  %vm493_vm11 = vweird.f32 %v954_v17  ;;  %vm492_vm13 = vweird.f32 %v947_v2 }
 0x137   : > { %v758_v25 = vpop.eup %757  ;;  %v956_v26 = vadd.f32 1.0, %v756_v21  ;;  %v490_v50 = vmul.f32 %v954_v17, %v489_v41  ;;  %v496_v1 = vand.u32 2147483647, %v947_v2 }
 0x138   : > { %v510_v29 = vsel %vm509_vm14, %v748_v7, %v506_v22  ;;  %v461_v30 = vadd.f32 %v752_v11, %v460_v23  ;;  %v518_v31 = vmul.f32 %v758_v25, %v440_v8  ;;  %vm523_vm3 = vweird.f32 %v758_v25 }
 0x139   : > { %v760_v32 = vpop.eup %759  ;;  %761 = vrcp.f32 %v956_v26  ;;  %v515_v33 = vsel %vm512_vm15, %v514_v27, %v510_v29  ;;  %vm524_vm6 = vmor %vm522_vm4, %vm523_vm3  ;;  %v543_v59 = vand.u32 2147483648, %v956_v26  ;;  %v541_v61 = vand.u32 2147483647, %v956_v26 }
 0x13a   : > { %576 = vmatmul.f32.vlgmr.msra.gmra.mxu3 %v515_v33  ;;  %v465_v35 = vsel %vm464_vm1, %v752_v11, %v461_v30  ;;  %v519_v36 = vsub.f32 1.0, %v518_v31  ;;  %v473_v37 = vmul.f32 %v760_v32, %v951_v12  ;;  %vm478_vm5 = vweird.f32 %v760_v32  ;;  %vm494_vm15 = vmor %vm492_vm13, %vm493_vm11 }
 0x13b   : > { %v470_v38 = vsel %vm467_vm2, %v469_v34, %v465_v35  ;;  %vm479_vm9 = vmor %vm477_vm8, %vm478_vm5  ;;  %v491_v62 = vadd.f32 %v954_v17, %v490_v50  ;;  %vm537_vm14 = vweird.f32 %v956_v26  ;;  %v544_v3 = vor.u32 1.1754944e-38, %v543_v59 }
 0x13c   : > { %567 = vmatmul.f32.gmra.mxu1 %v470_v38  ;;  %v520_v42 = vmul.f32 %v758_v25, %v519_v36  ;;  %v474_v43 = vsub.f32 1.0, %v473_v37  ;;  %vm542_vm1 = vcmp.eq.f32.partialorder %v541_v61, 8.507059e+37  ;;  %v499_v7 = vor.u32 1.1754944e-38, %v498_v63 }
 0x13d   : > { %v495_v5 = vsel %vm494_vm15, %v954_v17, %v491_v62  ;;  %vm497_vm2 = vcmp.eq.f32.partialorder %v496_v1, 8.507059e+37  ;;  %vm586_vm3 = vcmask 64512  }
 0x13e   : > { %v521_v45 = vadd.f32 %v758_v25, %v520_v42  ;;  %v475_v46 = vmul.f32 %v760_v32, %v474_v43  ;;  %v500_v8 = vsel %vm497_vm2, %v499_v7, %v495_v5 }
 0x13f   : > { %v762_v48 = vpop.eup %761 }
 0x140   : > { %v525_v51 = vsel %vm524_vm6, %v758_v25, %v521_v45  ;;  %v476_v52 = vadd.f32 %v760_v32, %v475_v46  ;;  %v533_v53 = vmul.f32 %v762_v48, %v956_v26  ;;  %vm538_vm12 = vweird.f32 %v762_v48 }
 0x141   : > { %v530_v54 = vsel %vm527_vm7, %v529_v49, %v525_v51  ;;  %vm539_vm0 = vmor %vm537_vm14, %vm538_vm12 }
 0x142   : > { %579 = vmatmul.f32.gmra.mxu3 %v530_v54  ;;  %v480_v56 = vsel %vm479_vm9, %v760_v32, %v476_v52  ;;  %v534_v57 = vsub.f32 1.0, %v533_v53 }
 0x143   : > { %v485_v58 = vsel %vm482_vm10, %v484_v55, %v480_v56 }
 0x144   : > { %570 = vmatmul.f32.gmra.mxu1 %v485_v58  ;;  %v535_v60 = vmul.f32 %v762_v48, %v534_v57 }
 0x146   : > { %v536_v0 = vadd.f32 %v762_v48, %v535_v60 }
 0x148   : > { %v540_v4 = vsel %vm539_vm0, %v762_v48, %v536_v0 }
 0x149   : > { %v545_v6 = vsel %vm542_vm1, %v544_v3, %v540_v4 }
 0x14a   : > { %582 = vmatmul.f32.gmra.mxu3 %v545_v6 }
 0x14c   : > { %573 = vmatmul.f32.gmra.mxu1 %v500_v8 }
 0x192   : > { %v565_v2 = vpop.f32.mrf.mxu1 }
 0x193   : > { %v566_v10 = vadd.f32 %v734_v9, %v565_v2 }
 0x195   : > { %587 = vst.msk [vmem:[%s221_s27] sm:$0xff] %vm586_vm3, %v566_v10 }
 0x1b9   : > { %v568_v11 = vpop.f32.mrf.mxu1 }
 0x1ba   : > { %v569_v12 = vadd.f32 %v734_v9, %v568_v11 }
 0x1bc   : > { %588 = vst.msk [vmem:[%s221_s27 + $0x8] sm:$0xff] %vm586_vm3, %v569_v12 }
 0x1bd   : > { %v577_v13 = vpop.f32.mrf.mxu3 }
 0x1be   : > { %v578_v14 = vadd.f32 %v734_v9, %v577_v13 }
 0x1c0   : > { %591 = vst.msk [vmem:[%s221_s27 + $0x20] sm:$0xff] %vm586_vm3, %v578_v14 }
 0x1c1   : > { %v571_v15 = vpop.f32.mrf.mxu1 }
 0x1c2   : > { %v572_v16 = vadd.f32 %v734_v9, %v571_v15 }
 0x1c4   : > { %589 = vst.msk [vmem:[%s221_s27 + $0x10] sm:$0xff] %vm586_vm3, %v572_v16 }
 0x1c5   : > { %v580_v17 = vpop.f32.mrf.mxu3 }
 0x1c6   : > { %v581_v18 = vadd.f32 %v734_v9, %v580_v17 }
 0x1c8   : > { %592 = vst.msk [vmem:[%s221_s27 + $0x28] sm:$0xff] %vm586_vm3, %v581_v18 }
 0x1c9   : > { %v574_v19 = vpop.f32.mrf.mxu1 }
 0x1ca   : > { %v575_v20 = vadd.f32 %v734_v9, %v574_v19 }
 0x1cc   : > { %590 = vst.msk [vmem:[%s221_s27 + $0x18] sm:$0xff] %vm586_vm3, %v575_v20 }
 0x1cd   : > { %v583_v21 = vpop.f32.mrf.mxu3 }
 0x1ce   : > { %v584_v22 = vadd.f32 %v734_v9, %v583_v21 }
 0x1d0   : > { %593 = vst.msk [vmem:[%s221_s27 + $0x30] sm:$0xff] %vm586_vm3, %v584_v22 }
 0x1d1 PF: > { %s14_s15 = sadd.s32 1, %s769_s15  }
 0x1d2   : > { %p11_p4 = scmp.ge.s32.totalorder %s14_s15, 4  }
 0x1d4   :  { %13 = sbr.rel (!%p11_p4) target bundleno = 1 (0x1), region = 69 }

</bundles_post_ra>
